<compile_context>
chip_gen: v7x
topology: tpu7x:2x2x1
jax: 0.10.0
libtpu: 0.0.40
codegen_flags: <defaults>
</compile_context>

<pallas_src>
import jax
import jax.numpy as jnp
from jax.experimental import pallas as pl
from jax.experimental.pallas import tpu as pltpu


# ---------------------------------------------------------------------------
# Kernels
# ---------------------------------------------------------------------------
def _disc_kernel(v_ref, b_ref, hpl_ref, hmi_ref, out_ref):
    """out[:, :F] = h_pl_tile @ V + b ; out[:, F:] = h_mi_tile @ V + b."""
    f = out_ref.shape[1] // 2
    v = v_ref[...]                              # (F*n_h, F) f32, VMEM-resident
    bias = b_ref[0, 0]                          # scalar from SMEM
    sc1 = jnp.dot(hpl_ref[...], v, preferred_element_type=jnp.float32) + bias
    sc2 = jnp.dot(hmi_ref[...], v, preferred_element_type=jnp.float32) + bias
    out_ref[:, :f] = sc1
    out_ref[:, f:] = sc2


def _disc_kernel_sbias(v_ref, b_ref, sb_ref, hpl_ref, hmi_ref, out_ref):
    """Same as _disc_kernel but with per-row sample biases fused in."""
    f = out_ref.shape[1] // 2
    v = v_ref[...]
    bias = b_ref[0, 0]
    sc1 = jnp.dot(hpl_ref[...], v, preferred_element_type=jnp.float32) + bias
    sc2 = jnp.dot(hmi_ref[...], v, preferred_element_type=jnp.float32) + bias
    out_ref[:, :f] = sc1 + sb_ref[:, :f]
    out_ref[:, f:] = sc2 + sb_ref[:, f:]


# ---------------------------------------------------------------------------
# Wrapper
# ---------------------------------------------------------------------------
def _as_col(x, n):
    x = jnp.asarray(x, jnp.float32)
    return jnp.broadcast_to(x.reshape(-1, 1), (n, 1))


def discriminator_forward(c, h_pl, h_mi, W, b, s_bias1=None, s_bias2=None,
                          *, tile_rows=None):
    """c: (n_h,), h_pl/h_mi: (N, n_h), W: (n_h, n_h), b: (1,) -> logits (N, 2)."""
    N, n_h = h_pl.shape
    assert h_mi.shape == (N, n_h)

    # Hoisted tiny GEMV: v[i] = sum_j W[i, j] * c[j].
    v = (W.astype(jnp.float32) @ c.astype(jnp.float32)).reshape(n_h)

    # Lane-dense fold for narrow hidden dims (contiguous reshape == bitcast).
    fold = 1
    if n_h < 128 and 128 % n_h == 0 and N % (128 // n_h) == 0:
        fold = 128 // n_h
    n2 = N // fold                 # folded row count
    k = fold * n_h                 # folded minor (lane) dim
    out_cols = 2 * fold

    h_pl2 = h_pl.reshape(n2, k)    # native dtype, no upcast
    h_mi2 = h_mi.reshape(n2, k)
    # Block-diagonal RHS: column g holds v in rows g*n_h:(g+1)*n_h.
    v_mat = jnp.kron(jnp.eye(fold, dtype=jnp.float32), v.reshape(n_h, 1))
    b_sc = jnp.asarray(b, jnp.float32).reshape(1, 1)

    # Tile rows: 2 streamed inputs x 2 pipeline buffers under ~8 MiB so the
    # same choice fits default scoped VMEM on v5e (16 MiB) and v6e/v7x (32 MiB),
    # while staying large enough to amortize the ~0.35 us per-grid-step cost.
    h_itemsize = jnp.dtype(h_pl.dtype).itemsize
    if tile_rows is None:
        vmem_budget = 8 * 1024 * 1024
        tile_rows = vmem_budget // (4 * k * h_itemsize)
        tile_rows = max(8, min(2048, (tile_rows // 8) * 8))
    tile_rows = int(min(tile_rows, n2))
    grid = (pl.cdiv(n2, tile_rows),)

    have_sbias = (s_bias1 is not None) or (s_bias2 is not None)

    in_specs = [
        pl.BlockSpec((k, fold), lambda i: (0, 0)),            # v_mat (resident)
        pl.BlockSpec(memory_space=pltpu.MemorySpace.SMEM),    # bias scalar
    ]
    inputs = [v_mat, b_sc]

    if have_sbias:
        sb1 = _as_col(s_bias1, N) if s_bias1 is not None else jnp.zeros((N, 1), jnp.float32)
        sb2 = _as_col(s_bias2, N) if s_bias2 is not None else jnp.zeros((N, 1), jnp.float32)
        sb = jnp.concatenate([sb1.reshape(n2, fold), sb2.reshape(n2, fold)], axis=1)
        in_specs.append(pl.BlockSpec((tile_rows, out_cols), lambda i: (i, 0)))
        inputs.append(sb)
        kernel = _disc_kernel_sbias
    else:
        kernel = _disc_kernel

    in_specs += [
        pl.BlockSpec((tile_rows, k), lambda i: (i, 0)),       # h_pl (streamed)
        pl.BlockSpec((tile_rows, k), lambda i: (i, 0)),       # h_mi (streamed)
    ]
    inputs += [h_pl2, h_mi2]

    cost = pl.CostEstimate(
        flops=4 * N * n_h,
        transcendentals=0,
        bytes_accessed=2 * N * n_h * h_itemsize + N * 2 * 4 + k * fold * 4,
    )

    out = pl.pallas_call(
        kernel,
        out_shape=jax.ShapeDtypeStruct((n2, out_cols), jnp.float32),
        grid=grid,
        in_specs=in_specs,
        out_specs=pl.BlockSpec((tile_rows, out_cols), lambda i: (i, 0)),
        compiler_params=pltpu.CompilerParams(
            dimension_semantics=("parallel",),
            vmem_limit_bytes=32 * 1024 * 1024,
        ),
        cost_estimate=cost,
    )(*inputs)

    if fold == 1:
        return out
    # Un-fold: columns [0:fold] are sc_1 groups, [fold:2*fold] are sc_2 groups.
    return jnp.stack([out[:, :fold].reshape(N), out[:, fold:].reshape(N)], axis=1)


# ---------------------------------------------------------------------------
# Reference & demo
# ---------------------------------------------------------------------------
def _reference_forward(c, h_pl, h_mi, W, b, s_bias1=None, s_bias2=None):
    v = W.astype(jnp.float32) @ c.astype(jnp.float32)
    sc1 = h_pl.astype(jnp.float32) @ v + b[0]
    sc2 = h_mi.astype(jnp.float32) @ v + b[0]
    if s_bias1 is not None:
        sc1 = sc1 + jnp.asarray(s_bias1, jnp.float32).reshape(-1)
    if s_bias2 is not None:
        sc2 = sc2 + jnp.asarray(s_bias2, jnp.float32).reshape(-1)
    return jnp.stack([sc1, sc2], axis=1)


if __name__ == "__main__":
    key = jax.random.PRNGKey(0)

    # --- Case 1: demo shapes (n_h < 128 exercises the lane-dense fold) ------
    n_h, N = 32, 8
    k_c, k_pl, k_mi, k_w, k_b1, k_b2 = jax.random.split(key, 6)
    c = jax.random.normal(k_c, (n_h,), dtype=jnp.float32)
    h_pl = jax.random.normal(k_pl, (N, n_h), dtype=jnp.float32)
    h_mi = jax.random.normal(k_mi, (N, n_h), dtype=jnp.float32)
    bound = float(jnp.sqrt(6.0 / (n_h * n_h + n_h)))   # xavier_uniform on (1,n_h,n_h)
    W = jax.random.uniform(k_w, (n_h, n_h), minval=-bound, maxval=bound,
                           dtype=jnp.float32)
    b = jnp.zeros((1,), dtype=jnp.float32)

    logits = jax.block_until_ready(discriminator_forward(c, h_pl, h_mi, W, b))
    ref = _reference_forward(c, h_pl, h_mi, W, b)
    assert logits.shape == (N, 2), logits.shape
    assert jnp.allclose(logits, ref, atol=1e-4, rtol=1e-4), (logits, ref)

    # with fused sample biases
    sb1 = jax.random.normal(k_b1, (N, 1), dtype=jnp.float32)
    sb2 = jax.random.normal(k_b2, (N, 1), dtype=jnp.float32)
    logits_b = jax.block_until_ready(
        discriminator_forward(c, h_pl, h_mi, W, b, sb1, sb2))
    ref_b = _reference_forward(c, h_pl, h_mi, W, b, sb1, sb2)
    assert jnp.allclose(logits_b, ref_b, atol=1e-4, rtol=1e-4), (logits_b, ref_b)

    # --- Case 2: lane-aligned hidden dim (fold == 1 path) -------------------
    n_h2, N2 = 256, 64
    k_c2, k_pl2, k_mi2, k_w2 = jax.random.split(jax.random.PRNGKey(1), 4)
    c2 = jax.random.normal(k_c2, (n_h2,), dtype=jnp.float32)
    hp2 = jax.random.normal(k_pl2, (N2, n_h2), dtype=jnp.float32)
    hm2 = jax.random.normal(k_mi2, (N2, n_h2), dtype=jnp.float32)
    W2 = jax.random.normal(k_w2, (n_h2, n_h2), dtype=jnp.float32) * 0.05
    b2 = jnp.full((1,), 0.1, dtype=jnp.float32)
    out2 = jax.block_until_ready(discriminator_forward(c2, hp2, hm2, W2, b2))
    ref2 = _reference_forward(c2, hp2, hm2, W2, b2)
    assert jnp.allclose(out2, ref2, atol=1e-3, rtol=1e-3)

    print("KERNEL_OK")
</pallas_src>

<mosaic_0001>
module attributes {stable_mosaic.version = 11 : i64} {
  func.func @_disc_kernel(%arg0: i32, %arg1: memref<128x4xf32, #tpu.memory_space<vmem>>, %arg2: memref<1x1xf32, #tpu.memory_space<smem>>, %arg3: memref<2x128xf32, #tpu.memory_space<vmem>>, %arg4: memref<2x128xf32, #tpu.memory_space<vmem>>, %arg5: memref<2x8xf32, #tpu.memory_space<vmem>>) attributes {dimension_semantics = [#tpu.dimension_semantics<parallel>], iteration_bounds = array<i64: 1>, scalar_prefetch = 0 : i64, scratch_operands = 0 : i64, tpu.core_type = #tpu.core_type<tc>, window_params = [{pipeline_mode = #tpu.pipeline_mode<synchronous>, transform_indices = @transform_0, window_bounds = array<i64: 128, 4>}, {transform_indices = @transform_1, window_bounds = array<i64: 1, 1>}, {transform_indices = @transform_2, window_bounds = array<i64: 2, 128>}, {transform_indices = @transform_3, window_bounds = array<i64: 2, 128>}, {transform_indices = @transform_4, window_bounds = array<i64: 2, 8>}]} {
    %c0 = arith.constant 0 : index
    %c0_0 = arith.constant 0 : index
    %0 = vector.load %arg1[%c0, %c0_0] : memref<128x4xf32, #tpu.memory_space<vmem>>, vector<128x4xf32>
    %c0_1 = arith.constant 0 : index
    %c0_2 = arith.constant 0 : index
    %1 = memref.load %arg2[%c0_1, %c0_2] : memref<1x1xf32, #tpu.memory_space<smem>>
    %c0_3 = arith.constant 0 : index
    %c0_4 = arith.constant 0 : index
    %2 = vector.load %arg3[%c0_3, %c0_4] : memref<2x128xf32, #tpu.memory_space<vmem>>, vector<2x128xf32>
    %cst = arith.constant dense<0.000000e+00> : vector<2x4xf32>
    %3 = tpu.matmul %2, %0, %cst {dimension_numbers = #tpu.dot_dimension_numbers<[1], [0], [0], [1], [0, 0, 1, 1], [], []>} : vector<2x128xf32>, vector<128x4xf32>, vector<2x4xf32> -> vector<2x4xf32>
    %4 = vector.broadcast %1 : f32 to vector<2x4xf32>
    %5 = arith.addf %3, %4 : vector<2x4xf32>
    %c0_5 = arith.constant 0 : index
    %c0_6 = arith.constant 0 : index
    %6 = vector.load %arg4[%c0_5, %c0_6] : memref<2x128xf32, #tpu.memory_space<vmem>>, vector<2x128xf32>
    %cst_7 = arith.constant dense<0.000000e+00> : vector<2x4xf32>
    %7 = tpu.matmul %6, %0, %cst_7 {dimension_numbers = #tpu.dot_dimension_numbers<[1], [0], [0], [1], [0, 0, 1, 1], [], []>} : vector<2x128xf32>, vector<128x4xf32>, vector<2x4xf32> -> vector<2x4xf32>
    %8 = vector.broadcast %1 : f32 to vector<2x4xf32>
    %9 = arith.addf %7, %8 : vector<2x4xf32>
    %c0_8 = arith.constant 0 : index
    %c0_9 = arith.constant 0 : index
    %10 = vector.load %arg5[%c0_8, %c0_9] : memref<2x8xf32, #tpu.memory_space<vmem>>, vector<2x4xf32>
    tpu.vector_store %arg5[%c0_8, %c0_9], %5 {strides = array<i32>} : memref<2x8xf32, #tpu.memory_space<vmem>>, vector<2x4xf32>,
    %c0_10 = arith.constant 0 : index
    %c4 = arith.constant 4 : index
    %11 = vector.load %arg5[%c0_10, %c4] : memref<2x8xf32, #tpu.memory_space<vmem>>, vector<2x4xf32>
    tpu.vector_store %arg5[%c0_10, %c4], %9 {strides = array<i32>} : memref<2x8xf32, #tpu.memory_space<vmem>>, vector<2x4xf32>,
    return
  }
  func.func @transform_0(%arg0: i32) -> (i32, i32) {
    %c0_i32 = arith.constant 0 : i32
    %c0_i32_0 = arith.constant 0 : i32
    %c0_i32_1 = arith.constant 0 : i32
    return %c0_i32, %c0_i32_0 : i32, i32
  }
  func.func @transform_1(%arg0: i32) -> (i32, i32) {
    %c0_i32 = arith.constant 0 : i32
    %c0_i32_0 = arith.constant 0 : i32
    %c0_i32_1 = arith.constant 0 : i32
    return %c0_i32, %c0_i32_0 : i32, i32
  }
  func.func @transform_2(%arg0: i32) -> (i32, i32) {
    %c0_i32 = arith.constant 0 : i32
    %c0_i32_0 = arith.constant 0 : i32
    return %arg0, %c0_i32 : i32, i32
  }
  func.func @transform_3(%arg0: i32) -> (i32, i32) {
    %c0_i32 = arith.constant 0 : i32
    %c0_i32_0 = arith.constant 0 : i32
    return %arg0, %c0_i32 : i32, i32
  }
  func.func @transform_4(%arg0: i32) -> (i32, i32) {
    %c0_i32 = arith.constant 0 : i32
    %c0_i32_0 = arith.constant 0 : i32
    return %arg0, %c0_i32 : i32, i32
  }
}

</mosaic_0001>

<bundles_post_ra>
// kernel: tpu_custom_call.1
= control target key start
LH: loop header
LB: loop body
LE: loop exit
PB: predicated region body
PF: predicated region fallthrough
CT: control target
= control target key end

     0   :  { %v382_v3 = vmov 0.0|0.0   ;;  %vm383_vm0 = vmmov 0   ;;  %v384_v6 = vmov 0.0   ;;  %s481_s0 = inlined_call_operand.vmem [shape: f32[128,4], index: 0, kind: input, shape index: {}]   ;;  %s482_s1 = inlined_call_operand.<no memory space> [shape: f32[1,1], index: 1, kind: input, shape index: {}]   ;;  %s483_s2 = inlined_call_operand.vmem [shape: f32[2,128], index: 2, kind: input, shape index: {}]   ;;  %s484_s3 = inlined_call_operand.vmem [shape: f32[2,128], index: 3, kind: input, shape index: {}]   ;;  %s485_s4 = inlined_call_operand.hbm [shape: f32[2,8], index: 4, kind: output, shape index: {}]  }
   0x1   :  { %v19_v0 = vld [vmem:[%s481_s0] sm:$0xff]  ;;  %v20_v1 = vld [vmem:[%s481_s0 + $0x8] sm:$0xff]  ;;  %v21_v2 = vld [vmem:[%s481_s0 + $0x10] sm:$0xff]  ;;  %329 = vmatprep.subr.bf16.mxu1 %v382_v3  ;;  %302 = vmatprep.mubr.msk.f32.mxu1 %vm383_vm0, %v384_v6 }
   0x2   :  { %v306_v4 = vpack.c.bf16 %v20_v1, %v19_v0  ;;  %v22_v5 = vld [vmem:[%s481_s0 + $0x18] sm:$0xff]  ;;  %305 = vmatprep.subr.bf16.mxu0 %v382_v3  ;;  %267 = vmatprep.mubr.msk.f32.mxu0 %vm383_vm0, %v384_v6  ;;  %v23_v8 = vld [vmem:[%s481_s0 + $0x20] sm:$0xff]  ;;  %v24_v9 = vld [vmem:[%s481_s0 + $0x28] sm:$0xff] }
   0x3   :  { %v309_v7 = vpack.c.bf16 %v22_v5, %v21_v2 }
   0x4   :  { %331 = vmatpush3.bf16.msra.mxu1 %v306_v4  ;;  %307 = vmatpush3.bf16.msra.mxu0 %v306_v4 }
   0x5   :  { %332 = vmatprep.subr.bf16.mxu1 %v382_v3  ;;  %308 = vmatprep.subr.bf16.mxu0 %v382_v3 }
   0x6   :  { %10 = vsyncpa [#allocation4], 0  ;;  %v312_v10 = vpack.c.bf16 %v24_v9, %v23_v8  ;;  %v25_v11 = vld [vmem:[%s481_s0 + $0x30] sm:$0xff]  ;;  %v26_v12 = vld [vmem:[%s481_s0 + $0x38] sm:$0xff]  ;;  %v37_v28 = vstv %s482_s1  ;;  %vm179_vm1 = vcmask 25600   ;;  %s385_s26 = smov 4  }
   0x7   :  { %v315_v13 = vpack.c.bf16 %v26_v12, %v25_v11  ;;  %v27_v14 = vld [vmem:[%s481_s0 + $0x40] sm:$0xff]  ;;  %v28_v15 = vld [vmem:[%s481_s0 + $0x48] sm:$0xff]  ;;  %v29_v17 = vld [vmem:[%s481_s0 + $0x50] sm:$0xff]  ;;  %vm185_vm2 = vcmask 58400  }
   0x8   :  { %334 = vmatpush3.bf16.msra.mxu1 %v309_v7  ;;  %310 = vmatpush3.bf16.msra.mxu0 %v309_v7  ;;  %v318_v16 = vpack.c.bf16 %v28_v15, %v27_v14  ;;  %v30_v18 = vld [vmem:[%s481_s0 + $0x58] sm:$0xff]  ;;  %v31_v20 = vld [vmem:[%s481_s0 + $0x60] sm:$0xff]  ;;  %v32_v21 = vld [vmem:[%s481_s0 + $0x68] sm:$0xff] }
   0x9   :  { %335 = vmatprep.subr.bf16.mxu1 %v382_v3  ;;  %311 = vmatprep.subr.bf16.mxu0 %v382_v3  ;;  %v321_v19 = vpack.c.bf16 %v30_v18, %v29_v17  ;;  %v324_v22 = vpack.c.bf16 %v32_v21, %v31_v20  ;;  %v33_v23 = vld [vmem:[%s481_s0 + $0x70] sm:$0xff]  ;;  %v34_v24 = vld [vmem:[%s481_s0 + $0x78] sm:$0xff]  ;;  %v108_v26 = vld [vmem:[%s484_s3] sm:$0x3]  ;;  %s386_s3 = smov [#allocation3]  }
   0xa   :  { %v327_v25 = vpack.c.bf16 %v34_v24, %v33_v23  ;;  %v36_v27 = vld [vmem:[%s483_s2] sm:$0x3]  ;;  %s193_s27 = sshll.u32 %s386_s3, 4  ;;  %s194_s27 = int_to_ptr.vmem [resolvable:$true] %s193_s27 }
   0xb   :  { %s358_s2 = scalar_lea.vmem %s194_s27, 32  ;;  %p363_p1 = scmp.lt.s32.totalorder %s194_s27, %s194_s27 }
   0xc   :  { %337 = vmatpush3.bf16.msra.mxu1 %v312_v10  ;;  %313 = vmatpush3.bf16.msra.mxu0 %v312_v10  ;;  %p359_p0 = scmp.ne.s32.totalorder %s194_s27, %s358_s2  ;;  %p364_p2 = scmp.lt.s32.totalorder %s358_s2, %s358_s2 }
   0xd   :  { %338 = vmatprep.subr.bf16.mxu1 %v382_v3  ;;  %314 = vmatprep.subr.bf16.mxu0 %v382_v3 }
   0xe   :  { %p365_p3 = por %p364_p2, %p363_p1 }
  0x10   :  { %340 = vmatpush3.bf16.msra.mxu1 %v315_v13  ;;  %316 = vmatpush3.bf16.msra.mxu0 %v315_v13  ;;  %p366_p4 = pnand %p365_p3, %p359_p0 }
  0x11   :  { %341 = vmatprep.subr.bf16.mxu1 %v382_v3  ;;  %317 = vmatprep.subr.bf16.mxu0 %v382_v3 }
  0x14   :  { %343 = vmatpush3.bf16.msra.mxu1 %v318_v16  ;;  %319 = vmatpush3.bf16.msra.mxu0 %v318_v16 }
  0x15   :  { %344 = vmatprep.subr.bf16.mxu1 %v382_v3  ;;  %320 = vmatprep.subr.bf16.mxu0 %v382_v3 }
  0x18   :  { %346 = vmatpush3.bf16.msra.mxu1 %v321_v19  ;;  %322 = vmatpush3.bf16.msra.mxu0 %v321_v19 }
  0x19   :  { %347 = vmatprep.subr.bf16.mxu1 %v382_v3  ;;  %323 = vmatprep.subr.bf16.mxu0 %v382_v3 }
  0x1c   :  { %349 = vmatpush3.bf16.msra.mxu1 %v324_v22  ;;  %325 = vmatpush3.bf16.msra.mxu0 %v324_v22 }
  0x1d   :  { %350 = vmatprep.subr.bf16.mxu1 %v382_v3  ;;  %326 = vmatprep.subr.bf16.mxu0 %v382_v3 }
  0x20   :  { %352 = vmatpush3.bf16.msra.mxu1 %v327_v25  ;;  %328 = vmatpush3.bf16.msra.mxu0 %v327_v25 }
  0x23   :  { %303 = vmatmul.mubr.f32.vlgmr.msra.gmra.mrb[0].mxu1 %v108_v26  ;;  %268 = vmatmul.mubr.f32.vlgmr.msra.gmra.mrb[0].mxu0 %v36_v27 }
  0xf6   :  { %v175_v29 = vpop.f32.mrb[0].mxu1  ;;  %v104_v30 = vpop.f32.mrb[0].mxu0 }
  0xf7   :  { %v176_v31 = vadd.f32 %v175_v29, %v37_v28  ;;  %v304_v32 = vpop.f32.mrb[1].mxu1  ;;  %v105_v33 = vadd.f32 %v104_v30, %v37_v28  ;;  %v269_v34 = vpop.f32.mrb[1].mxu0 }
  0xf9   :  { %182 = vrot.lane.b32.xlu0 %v176_v31, %s385_s26  ;;  %180 = vst.msk [vmem:[#allocation3] sm:$0x3] %vm179_vm1, %v105_v33 }
 0x16b   :  { %v183_v35 = vpop.permute.xlu0 %182 }
 0x16c   :  { %186 = vst.msk [vmem:[#allocation3] sm:$0x3] %vm185_vm2, %v183_v35 }
 0x16d   :  { %369 = shalt.err (!%p366_p4)
}
 0x16e   :  { %s370_s29 = scalar_lea.hbm %s485_s4, 32 }
 0x16f   :  { %p371_p5 = scmp.ne.s32.totalorder %s485_s4, %s370_s29  ;;  %p374_p6 = scmp.lt.u32.totalorder %s370_s29, %s485_s4 }
 0x171   :  { %p376_p7 = pnand %p374_p6, %p371_p5 }
 0x173   :  { %379 = shalt.err (!%p376_p7)
}
 0x174   :  { %196 = dma.vmem_to_hbm [thread:$0]  %s194_s27, 32, %s485_s4, [#allocation4]  }
 0x175   :  { %380 = dma.done.wait [#allocation4], 32  }
 0x176   :  { %381 = vsyncadd [#allocation4], 4294967264 }
 0x177   :  { %200 = vsyncpa [#allocation4], 1 }

</bundles_post_ra>
